<compile_context>
chip_gen: v7x
topology: tpu7x:2x2x1
jax: 0.10.0
libtpu: 0.0.40
codegen_flags: <defaults>
</compile_context>

<pallas_src>
import functools

import jax
import jax.numpy as jnp
from jax.experimental import pallas as pl
from jax.experimental.pallas import tpu as pltpu


# ---------------------------------------------------------------------------
# Fused tower kernel (one batch tile per grid step):
#   conv(k, wd) + max-pool over time + bias + ReLU per review, sentiment
#   softmax weighting, weighted sum over reviews, fc + ReLU, packed output.
# ---------------------------------------------------------------------------
def fused_tower_kernel(emb_ref, wcat_ref, cb_ref, pol_ref, subj_ref,
                       idemb_ref, fcw_ref, fcb_ref, o_ref,
                       *, tb, r_num, r_len, kernel_size):
    F = cb_ref.shape[1]
    N = tb * r_num                        # reviews in this tile
    L = r_len - kernel_size + 1           # valid conv positions per review

    # ---- conv as ONE wide bf16 MXU matmul over all reviews in the tile -----
    x = emb_ref[...]                                               # (N*r_len, wd) bf16
    y = jnp.dot(x, wcat_ref[...],
                preferred_element_type=jnp.float32)                # (N*r_len, k*F) f32
    y3 = y.reshape(N, r_len, kernel_size * F)

    # vectorized shift-add over the k taps (stays inside each review)
    acc = y3[:, 0:L, 0:F]
    for j in range(1, kernel_size):
        acc = acc + y3[:, j:j + L, j * F:(j + 1) * F]              # (N, L, F)

    # ---- vectorized max-pool over time; bias + ReLU after the pool ---------
    # (equivalent: bias is constant over time and ReLU is monotone)
    fea = jnp.max(acc, axis=1)                                     # (N, F)
    fea = jnp.maximum(fea + cb_ref[...], 0.0)                      # (N, F)

    # ---- sentiment softmax weights over reviews (lane-axis softmax, f32) ---
    def softmax_lanes(v):
        m = jnp.max(v, axis=-1, keepdims=True)
        e = jnp.exp(v - m)
        return e / jnp.sum(e, axis=-1, keepdims=True)

    pol = softmax_lanes(pol_ref[:, 0, :] * (1.0 / 10000.0))        # (tb, r_num)
    subj = softmax_lanes(subj_ref[:, 0, :] * (1.0 / 10000.0))      # (tb, r_num)
    w = pol * subj * float(r_num)                                  # (tb, r_num)

    # ---- weighted sum over reviews on the VPU (no 1-row MXU pushes) --------
    fea3 = fea.reshape(tb, r_num, F)
    r_fea = jnp.sum(fea3 * w[:, :, None], axis=1)                  # (tb, F)
    # TODO(synk): nn.Dropout(r_fea) is identity in eval mode; train-mode dropout
    # is not implemented here.

    # ---- fc + ReLU, packed with ReLU(id_emb) into ONE lane-dense store -----
    fc = jnp.dot(r_fea, fcw_ref[...],
                 preferred_element_type=jnp.float32) + fcb_ref[...]  # (tb, E)
    out = jnp.concatenate([jnp.maximum(idemb_ref[:, 0, :], 0.0),
                           jnp.maximum(fc, 0.0)], axis=-1)           # (tb, 2E)
    o_ref[:, 0, :] = out


def fused_tower(emb2d, wcat, cnn_b, pol3, subj3, idemb3, fc_w_t, fc_b,
                *, bs, r_num, r_len, kernel_size, block_bs=None):
    """emb2d: (bs*r_num*r_len, wd) bf16, wcat: (wd, k*F) bf16, cnn_b: (1, F),
    pol3/subj3: (bs, 1, r_num), idemb3: (bs, 1, E), fc_w_t: (F, E),
    fc_b: (1, E)  ->  (bs, 2, E) f32."""
    M, wd = emb2d.shape
    kF = wcat.shape[1]
    F = cnn_b.shape[1]
    E = fc_b.shape[1]
    assert r_len >= kernel_size, "r_len must be >= kernel_size"
    assert M == bs * r_num * r_len

    rows_per_sample = r_num * r_len
    if block_bs is None:
        # target ~1024 embedding rows per grid step: big enough to amortize the
        # ~0.35us/step pipeline overhead, small enough that the double-buffered
        # inputs + (rows, k*F) f32 intermediate fit scoped VMEM on v5e/v6e/v7x.
        block_bs = max(1, min(bs, 1024 // max(1, rows_per_sample)))
    block_bs = max(1, min(block_bs, bs))
    while bs % block_bs != 0:
        block_bs -= 1
    if (block_bs * rows_per_sample) % 8 != 0 and block_bs != bs:
        block_bs = bs                       # keep the emb block sublane-aligned
    steps = bs // block_bs
    rows = block_bs * rows_per_sample

    kern = functools.partial(fused_tower_kernel, tb=block_bs, r_num=r_num,
                             r_len=r_len, kernel_size=kernel_size)
    out = pl.pallas_call(
        kern,
        out_shape=jax.ShapeDtypeStruct((bs, 1, 2 * E), jnp.float32),
        grid=(steps,),
        in_specs=[
            pl.BlockSpec((rows, wd), lambda i: (i, 0)),            # emb tile
            pl.BlockSpec((wd, kF), lambda i: (0, 0)),              # conv weights
            pl.BlockSpec((1, F), lambda i: (0, 0)),                # conv bias
            pl.BlockSpec((block_bs, 1, r_num), lambda i: (i, 0, 0)),  # polarity
            pl.BlockSpec((block_bs, 1, r_num), lambda i: (i, 0, 0)),  # subjectivity
            pl.BlockSpec((block_bs, 1, E), lambda i: (i, 0, 0)),   # id embedding
            pl.BlockSpec((F, E), lambda i: (0, 0)),                # fc weight
            pl.BlockSpec((1, E), lambda i: (0, 0)),                # fc bias
        ],
        out_specs=pl.BlockSpec((block_bs, 1, 2 * E), lambda i: (i, 0, 0)),
        compiler_params=pltpu.CompilerParams(
            dimension_semantics=("parallel",)),
    )(emb2d, wcat, cnn_b, pol3, subj3, idemb3, fc_w_t, fc_b)
    return out.reshape(bs, 2, E)


# ---------------------------------------------------------------------------
# Net (one tower) and MSCI0D1T1 (user + item towers)
# ---------------------------------------------------------------------------
def init_net_params(key, id_num, vocab_size, word_dim, filters_num,
                    kernel_size, id_emb_size):
    k = jax.random.split(key, 4)

    def xavier(rng, shape, fan_in, fan_out):
        std = (2.0 / (fan_in + fan_out)) ** 0.5
        return std * jax.random.normal(rng, shape, jnp.float32)

    return {
        "id_embedding": xavier(k[0], (id_num, id_emb_size), id_num, id_emb_size),
        "word_embs": xavier(k[1], (vocab_size, word_dim), vocab_size, word_dim),
        # conv weight stored as (k, wd, F) with cnn_w[j, w, f] = torch_w[f, 0, j, w]
        "cnn_w": xavier(k[2], (kernel_size, word_dim, filters_num),
                        kernel_size * word_dim, filters_num),
        "cnn_b": jnp.full((1, filters_num), 0.1, jnp.float32),
        # fc weight stored pre-transposed (F, E); bias = 0.1 (like reset_para)
        "fc_w_t": jax.random.uniform(k[3], (filters_num, id_emb_size),
                                     jnp.float32, -0.1, 0.1),
        "fc_b": jnp.full((1, id_emb_size), 0.1, jnp.float32),
    }


def net_forward(params, reviews, ids, sentiments, *, block_bs=None):
    # reviews: (bs, r_num, r_len) int32 ; ids: (bs,) int32 ; sentiments: (bs, r_num, 3)
    bs, r_num, r_len = reviews.shape
    k, wd, F = params["cnn_w"].shape

    # word-embedding gather in bf16 (halves HBM bytes of the dominant slab)
    emb2d = jnp.take(params["word_embs"].astype(jnp.bfloat16),
                     reviews.reshape(-1), axis=0)               # (bs*r_num*r_len, wd)
    wcat = jnp.transpose(params["cnn_w"], (1, 0, 2)).reshape(
        wd, k * F).astype(jnp.bfloat16)                          # (wd, k*F)
    idemb3 = jnp.take(params["id_embedding"], ids, axis=0)[:, None, :]  # (bs,1,E)
    sent = sentiments.astype(jnp.float32)
    pol3 = sent[:, :, 0].reshape(bs, 1, r_num)
    subj3 = sent[:, :, 1].reshape(bs, 1, r_num)      # column 2 unused (matches torch)

    return fused_tower(emb2d, wcat, params["cnn_b"], pol3, subj3, idemb3,
                       params["fc_w_t"], params["fc_b"],
                       bs=bs, r_num=r_num, r_len=r_len, kernel_size=k,
                       block_bs=block_bs)


def msci0d1t1_forward(user_params, item_params, datas, *, block_bs=None):
    (user_reviews, item_reviews, uids, iids,
     _user_item2id, _item_user2id, _user_doc, _item_doc,
     user_sentiments, item_sentiments) = datas
    u_fea = net_forward(user_params, user_reviews, uids, user_sentiments,
                        block_bs=block_bs)
    i_fea = net_forward(item_params, item_reviews, iids, item_sentiments,
                        block_bs=block_bs)
    return u_fea, i_fea


# ---------------------------------------------------------------------------
# Pure-JAX f32 reference (mirrors the PyTorch module) for a correctness check.
# ---------------------------------------------------------------------------
def net_reference(params, reviews, ids, sentiments):
    emb = jnp.take(params["word_embs"], reviews, axis=0)
    bs, r_num, r_len, wd = emb.shape
    k = params["cnn_w"].shape[0]
    L = r_len - k + 1
    x = emb.reshape(bs * r_num, r_len, wd)
    conv = sum(jnp.einsum("ntw,wf->ntf", x[:, j:j + L, :], params["cnn_w"][j])
               for j in range(k)) + params["cnn_b"][0]
    fea = jnp.max(jax.nn.relu(conv), axis=1).reshape(bs, r_num, -1)
    sent = sentiments.astype(jnp.float32)
    pol = jax.nn.softmax(sent[:, :, 0:1] / 10000.0, axis=1)
    subj = jax.nn.softmax(sent[:, :, 1:2] / 10000.0, axis=1)
    r_fea = jnp.sum(fea * pol * float(r_num) * subj, axis=1)
    id_emb = jnp.take(params["id_embedding"], ids, axis=0)
    fc = r_fea @ params["fc_w_t"] + params["fc_b"][0]
    return jnp.stack([jax.nn.relu(id_emb), jax.nn.relu(fc)], axis=1)


# ---------------------------------------------------------------------------
if __name__ == "__main__":
    # small, module-consistent shapes
    bs, r_num, r_len = 2, 4, 16
    vocab_size, word_dim = 100, 32
    filters_num, kernel_size, id_emb_size = 32, 3, 32
    user_num, item_num = 10, 12

    root = jax.random.PRNGKey(0)
    ku, ki, kd = jax.random.split(root, 3)
    user_params = init_net_params(ku, user_num, vocab_size, word_dim,
                                  filters_num, kernel_size, id_emb_size)
    item_params = init_net_params(ki, item_num, vocab_size, word_dim,
                                  filters_num, kernel_size, id_emb_size)

    d = jax.random.split(kd, 6)
    user_reviews = jax.random.randint(d[0], (bs, r_num, r_len), 0, vocab_size, jnp.int32)
    item_reviews = jax.random.randint(d[1], (bs, r_num, r_len), 0, vocab_size, jnp.int32)
    uids = jax.random.randint(d[2], (bs,), 0, user_num, jnp.int32)
    iids = jax.random.randint(d[3], (bs,), 0, item_num, jnp.int32)
    user_sentiments = jax.random.uniform(d[4], (bs, r_num, 3), jnp.float32, -1.0, 1.0) * 10000.0
    item_sentiments = jax.random.uniform(d[5], (bs, r_num, 3), jnp.float32, -1.0, 1.0) * 10000.0

    # *_item2id / *_doc are unused by this model's forward; pass placeholders.
    user_item2id = jnp.zeros((bs, r_num), jnp.int32)
    item_user2id = jnp.zeros((bs, r_num), jnp.int32)
    user_doc = jnp.zeros((bs, r_len), jnp.int32)
    item_doc = jnp.zeros((bs, r_len), jnp.int32)

    datas = (user_reviews, item_reviews, uids, iids,
             user_item2id, item_user2id, user_doc, item_doc,
             user_sentiments, item_sentiments)

    # block_bs=1 exercises the multi-step (grid=(2,)) pipelined path.
    u_fea, i_fea = msci0d1t1_forward(user_params, item_params, datas, block_bs=1)
    jax.block_until_ready((u_fea, i_fea))
    assert u_fea.shape == (bs, 2, id_emb_size)
    assert i_fea.shape == (bs, 2, id_emb_size)

    # correctness check against the pure-JAX f32 reference (kernel uses bf16
    # MXU operands for the conv matmul, hence the loosened tolerance).
    u_ref = net_reference(user_params, user_reviews, uids, user_sentiments)
    i_ref = net_reference(item_params, item_reviews, iids, item_sentiments)
    assert jnp.allclose(u_fea, u_ref, atol=2e-2, rtol=2e-2), \
        float(jnp.max(jnp.abs(u_fea - u_ref)))
    assert jnp.allclose(i_fea, i_ref, atol=2e-2, rtol=2e-2), \
        float(jnp.max(jnp.abs(i_fea - i_ref)))

    print("KERNEL_OK")
</pallas_src>

<mosaic_0001>
module attributes {stable_mosaic.version = 11 : i64} {
  func.func @fused_tower_kernel(%arg0: i32, %arg1: memref<64x32xbf16, #tpu.memory_space<vmem>>, %arg2: memref<32x96xbf16, #tpu.memory_space<vmem>>, %arg3: memref<1x32xf32, #tpu.memory_space<vmem>>, %arg4: memref<1x1x4xf32, #tpu.memory_space<vmem>>, %arg5: memref<1x1x4xf32, #tpu.memory_space<vmem>>, %arg6: memref<1x1x32xf32, #tpu.memory_space<vmem>>, %arg7: memref<32x32xf32, #tpu.memory_space<vmem>>, %arg8: memref<1x32xf32, #tpu.memory_space<vmem>>, %arg9: memref<1x1x64xf32, #tpu.memory_space<vmem>>) attributes {dimension_semantics = [#tpu.dimension_semantics<parallel>], iteration_bounds = array<i64: 2>, scalar_prefetch = 0 : i64, scratch_operands = 0 : i64, tpu.core_type = #tpu.core_type<tc>, window_params = [{transform_indices = @transform_0, window_bounds = array<i64: 64, 32>}, {pipeline_mode = #tpu.pipeline_mode<synchronous>, transform_indices = @transform_1, window_bounds = array<i64: 32, 96>}, {pipeline_mode = #tpu.pipeline_mode<synchronous>, transform_indices = @transform_2, window_bounds = array<i64: 1, 32>}, {transform_indices = @transform_3, window_bounds = array<i64: 1, 1, 4>}, {transform_indices = @transform_4, window_bounds = array<i64: 1, 1, 4>}, {transform_indices = @transform_5, window_bounds = array<i64: 1, 1, 32>}, {pipeline_mode = #tpu.pipeline_mode<synchronous>, transform_indices = @transform_6, window_bounds = array<i64: 32, 32>}, {pipeline_mode = #tpu.pipeline_mode<synchronous>, transform_indices = @transform_7, window_bounds = array<i64: 1, 32>}, {transform_indices = @transform_8, window_bounds = array<i64: 1, 1, 64>}]} {
    %c0 = arith.constant 0 : index
    %c0_0 = arith.constant 0 : index
    %0 = vector.load %arg1[%c0, %c0_0] : memref<64x32xbf16, #tpu.memory_space<vmem>>, vector<64x32xbf16>
    %c0_1 = arith.constant 0 : index
    %c0_2 = arith.constant 0 : index
    %1 = vector.load %arg2[%c0_1, %c0_2] : memref<32x96xbf16, #tpu.memory_space<vmem>>, vector<32x96xbf16>
    %cst = arith.constant dense<0.000000e+00> : vector<64x96xf32>
    %2 = tpu.matmul %0, %1, %cst {dimension_numbers = #tpu.dot_dimension_numbers<[1], [0], [0], [1], [0, 0, 1, 1], [], []>} : vector<64x32xbf16>, vector<32x96xbf16>, vector<64x96xf32> -> vector<64x96xf32>
    %3 = vector.shape_cast %2 : vector<64x96xf32> to vector<4x16x96xf32>
    %4 = vector.extract_strided_slice %3 {offsets = [0, 0, 0], sizes = [4, 14, 32], strides = [1, 1, 1]} : vector<4x16x96xf32> to vector<4x14x32xf32>
    %5 = vector.extract_strided_slice %3 {offsets = [0, 1, 32], sizes = [4, 14, 32], strides = [1, 1, 1]} : vector<4x16x96xf32> to vector<4x14x32xf32>
    %6 = arith.addf %4, %5 : vector<4x14x32xf32>
    %7 = vector.extract_strided_slice %3 {offsets = [0, 2, 64], sizes = [4, 14, 32], strides = [1, 1, 1]} : vector<4x16x96xf32> to vector<4x14x32xf32>
    %8 = arith.addf %6, %7 : vector<4x14x32xf32>
    %cst_3 = arith.constant dense<0xFF800000> : vector<4x32xf32>
    %9 = vector.multi_reduction <maximumf>, %8, %cst_3 [1] : vector<4x14x32xf32> to vector<4x32xf32>
    %c0_4 = arith.constant 0 : index
    %c0_5 = arith.constant 0 : index
    %10 = vector.load %arg3[%c0_4, %c0_5] : memref<1x32xf32, #tpu.memory_space<vmem>>, vector<1x32xf32>
    %11 = vector.broadcast %10 : vector<1x32xf32> to vector<4x32xf32>
    %12 = arith.addf %9, %11 : vector<4x32xf32>
    %cst_6 = arith.constant 0.000000e+00 : f32
    %13 = vector.broadcast %cst_6 : f32 to vector<4x32xf32>
    %14 = arith.maximumf %12, %13 : vector<4x32xf32>
    %c0_7 = arith.constant 0 : index
    %c0_8 = arith.constant 0 : index
    %c0_9 = arith.constant 0 : index
    %15 = vector.load %arg4[%c0_7, %c0_8, %c0_9] : memref<1x1x4xf32, #tpu.memory_space<vmem>>, vector<1x1x4xf32>
    %16 = vector.shape_cast %15 : vector<1x1x4xf32> to vector<1x4xf32>
    %cst_10 = arith.constant 9.99999974E-5 : f32
    %17 = vector.broadcast %cst_10 : f32 to vector<1x4xf32>
    %18 = arith.mulf %16, %17 : vector<1x4xf32>
    %cst_11 = arith.constant dense<0xFF800000> : vector<1xf32>
    %19 = vector.multi_reduction <maximumf>, %18, %cst_11 [1] : vector<1x4xf32> to vector<1xf32>
    %20 = vector.shape_cast %19 : vector<1xf32> to vector<1x1xf32>
    %21 = vector.broadcast %20 : vector<1x1xf32> to vector<1x4xf32>
    %22 = arith.subf %18, %21 : vector<1x4xf32>
    %23 = math.exp %22 : vector<1x4xf32>
    %cst_12 = arith.constant dense<0.000000e+00> : vector<1xf32>
    %24 = vector.multi_reduction <add>, %23, %cst_12 [1] : vector<1x4xf32> to vector<1xf32>
    %25 = vector.shape_cast %24 : vector<1xf32> to vector<1x1xf32>
    %26 = vector.broadcast %25 : vector<1x1xf32> to vector<1x4xf32>
    %27 = arith.divf %23, %26 : vector<1x4xf32>
    %c0_13 = arith.constant 0 : index
    %c0_14 = arith.constant 0 : index
    %c0_15 = arith.constant 0 : index
    %28 = vector.load %arg5[%c0_13, %c0_14, %c0_15] : memref<1x1x4xf32, #tpu.memory_space<vmem>>, vector<1x1x4xf32>
    %29 = vector.shape_cast %28 : vector<1x1x4xf32> to vector<1x4xf32>
    %cst_16 = arith.constant 9.99999974E-5 : f32
    %30 = vector.broadcast %cst_16 : f32 to vector<1x4xf32>
    %31 = arith.mulf %29, %30 : vector<1x4xf32>
    %cst_17 = arith.constant dense<0xFF800000> : vector<1xf32>
    %32 = vector.multi_reduction <maximumf>, %31, %cst_17 [1] : vector<1x4xf32> to vector<1xf32>
    %33 = vector.shape_cast %32 : vector<1xf32> to vector<1x1xf32>
    %34 = vector.broadcast %33 : vector<1x1xf32> to vector<1x4xf32>
    %35 = arith.subf %31, %34 : vector<1x4xf32>
    %36 = math.exp %35 : vector<1x4xf32>
    %cst_18 = arith.constant dense<0.000000e+00> : vector<1xf32>
    %37 = vector.multi_reduction <add>, %36, %cst_18 [1] : vector<1x4xf32> to vector<1xf32>
    %38 = vector.shape_cast %37 : vector<1xf32> to vector<1x1xf32>
    %39 = vector.broadcast %38 : vector<1x1xf32> to vector<1x4xf32>
    %40 = arith.divf %36, %39 : vector<1x4xf32>
    %41 = arith.mulf %27, %40 : vector<1x4xf32>
    %cst_19 = arith.constant 4.000000e+00 : f32
    %42 = vector.broadcast %cst_19 : f32 to vector<1x4xf32>
    %43 = arith.mulf %41, %42 : vector<1x4xf32>
    %44 = vector.shape_cast %14 : vector<4x32xf32> to vector<1x4x32xf32>
    %45 = vector.shape_cast %43 : vector<1x4xf32> to vector<1x4x1xf32>
    %46 = vector.broadcast %45 : vector<1x4x1xf32> to vector<1x4x32xf32>
    %47 = arith.mulf %44, %46 : vector<1x4x32xf32>
    %cst_20 = arith.constant dense<0.000000e+00> : vector<1x32xf32>
    %48 = vector.multi_reduction <add>, %47, %cst_20 [1] : vector<1x4x32xf32> to vector<1x32xf32>
    %c0_21 = arith.constant 0 : index
    %c0_22 = arith.constant 0 : index
    %49 = vector.load %arg7[%c0_21, %c0_22] : memref<32x32xf32, #tpu.memory_space<vmem>>, vector<32x32xf32>
    %cst_23 = arith.constant dense<0.000000e+00> : vector<1x32xf32>
    %50 = tpu.matmul %48, %49, %cst_23 {dimension_numbers = #tpu.dot_dimension_numbers<[1], [0], [0], [1], [0, 0, 1, 1], [], []>} : vector<1x32xf32>, vector<32x32xf32>, vector<1x32xf32> -> vector<1x32xf32>
    %c0_24 = arith.constant 0 : index
    %c0_25 = arith.constant 0 : index
    %51 = vector.load %arg8[%c0_24, %c0_25] : memref<1x32xf32, #tpu.memory_space<vmem>>, vector<1x32xf32>
    %52 = arith.addf %50, %51 : vector<1x32xf32>
    %c0_26 = arith.constant 0 : index
    %c0_27 = arith.constant 0 : index
    %c0_28 = arith.constant 0 : index
    %53 = vector.load %arg6[%c0_26, %c0_27, %c0_28] : memref<1x1x32xf32, #tpu.memory_space<vmem>>, vector<1x1x32xf32>
    %54 = vector.shape_cast %53 : vector<1x1x32xf32> to vector<1x32xf32>
    %cst_29 = arith.constant 0.000000e+00 : f32
    %55 = vector.broadcast %cst_29 : f32 to vector<1x32xf32>
    %56 = arith.maximumf %54, %55 : vector<1x32xf32>
    %cst_30 = arith.constant 0.000000e+00 : f32
    %57 = vector.broadcast %cst_30 : f32 to vector<1x32xf32>
    %58 = arith.maximumf %52, %57 : vector<1x32xf32>
    %59 = tpu.concatenate %56, %58 in 1 : vector<1x32xf32>, vector<1x32xf32> -> vector<1x64xf32>
    %c0_31 = arith.constant 0 : index
    %c0_32 = arith.constant 0 : index
    %c0_33 = arith.constant 0 : index
    %60 = vector.load %arg9[%c0_31, %c0_32, %c0_33] : memref<1x1x64xf32, #tpu.memory_space<vmem>>, vector<1x1x64xf32>
    %61 = vector.shape_cast %60 : vector<1x1x64xf32> to vector<1x64xf32>
    %62 = vector.shape_cast %59 : vector<1x64xf32> to vector<1x1x64xf32>
    tpu.vector_store %arg9[%c0_31, %c0_32, %c0_33], %62 {strides = array<i32>} : memref<1x1x64xf32, #tpu.memory_space<vmem>>, vector<1x1x64xf32>,
    return
  }
  func.func @transform_0(%arg0: i32) -> (i32, i32) {
    %c0_i32 = arith.constant 0 : i32
    %c0_i32_0 = arith.constant 0 : i32
    return %arg0, %c0_i32 : i32, i32
  }
  func.func @transform_1(%arg0: i32) -> (i32, i32) {
    %c0_i32 = arith.constant 0 : i32
    %c0_i32_0 = arith.constant 0 : i32
    %c0_i32_1 = arith.constant 0 : i32
    return %c0_i32, %c0_i32_0 : i32, i32
  }
  func.func @transform_2(%arg0: i32) -> (i32, i32) {
    %c0_i32 = arith.constant 0 : i32
    %c0_i32_0 = arith.constant 0 : i32
    %c0_i32_1 = arith.constant 0 : i32
    return %c0_i32, %c0_i32_0 : i32, i32
  }
  func.func @transform_3(%arg0: i32) -> (i32, i32, i32) {
    %c0_i32 = arith.constant 0 : i32
    %c0_i32_0 = arith.constant 0 : i32
    %c0_i32_1 = arith.constant 0 : i32
    return %arg0, %c0_i32, %c0_i32_0 : i32, i32, i32
  }
  func.func @transform_4(%arg0: i32) -> (i32, i32, i32) {
    %c0_i32 = arith.constant 0 : i32
    %c0_i32_0 = arith.constant 0 : i32
    %c0_i32_1 = arith.constant 0 : i32
    return %arg0, %c0_i32, %c0_i32_0 : i32, i32, i32
  }
  func.func @transform_5(%arg0: i32) -> (i32, i32, i32) {
    %c0_i32 = arith.constant 0 : i32
    %c0_i32_0 = arith.constant 0 : i32
    %c0_i32_1 = arith.constant 0 : i32
    return %arg0, %c0_i32, %c0_i32_0 : i32, i32, i32
  }
  func.func @transform_6(%arg0: i32) -> (i32, i32) {
    %c0_i32 = arith.constant 0 : i32
    %c0_i32_0 = arith.constant 0 : i32
    %c0_i32_1 = arith.constant 0 : i32
    return %c0_i32, %c0_i32_0 : i32, i32
  }
  func.func @transform_7(%arg0: i32) -> (i32, i32) {
    %c0_i32 = arith.constant 0 : i32
    %c0_i32_0 = arith.constant 0 : i32
    %c0_i32_1 = arith.constant 0 : i32
    return %c0_i32, %c0_i32_0 : i32, i32
  }
  func.func @transform_8(%arg0: i32) -> (i32, i32, i32) {
    %c0_i32 = arith.constant 0 : i32
    %c0_i32_0 = arith.constant 0 : i32
    %c0_i32_1 = arith.constant 0 : i32
    return %arg0, %c0_i32, %c0_i32_0 : i32, i32, i32
  }
}

</mosaic_0001>

<bundles_post_ra>
// kernel: tpu_custom_call.1
= control target key start
LH: loop header
LB: loop body
LE: loop exit
PB: predicated region body
PF: predicated region fallthrough
CT: control target
= control target key end

     0   :  { %13 = vsyncpa [#allocation3], 0  ;;  %s1326_s0 = inlined_call_operand.vmem [shape: bf16[128,32], index: 0, kind: input, shape index: {}]   ;;  %s1327_s1 = inlined_call_operand.vmem [shape: bf16[32,96], index: 1, kind: input, shape index: {}]   ;;  %s1328_s2 = inlined_call_operand.vmem [shape: f32[1,32], index: 2, kind: input, shape index: {}]   ;;  %s1329_s3 = inlined_call_operand.vmem [shape: f32[2,1,4], index: 3, kind: input, shape index: {}]   ;;  %s1330_s4 = inlined_call_operand.vmem [shape: f32[2,1,4], index: 4, kind: input, shape index: {}]   ;;  %s1331_s5 = inlined_call_operand.vmem [shape: f32[2,1,32], index: 5, kind: input, shape index: {}]   ;;  %s1332_s6 = inlined_call_operand.vmem [shape: f32[32,32], index: 6, kind: input, shape index: {}]   ;;  %s1333_s7 = inlined_call_operand.vmem [shape: f32[1,32], index: 7, kind: input, shape index: {}]   ;;  %s1334_s8 = inlined_call_operand.hbm [shape: f32[2,1,64], index: 8, kind: output, shape index: {}]  }
   0x1   :  { %15 = vsyncpa [#allocation3 + $0x1], 0  ;;  %s1113_s27 = smov 0   ;;  %s1115_s28 = smov 0  }
   0x2   :  { %s1117_s29 = smov 0   ;;  %s1119_s30 = smov 0  }
   0x3 LB: > { %s1134_s9 = sadd.s32 4294967295, %s1059_s30   ;;  %s873_s10 = sadd.s32 4294967294, %s1059_s30   ;;  %s1059_s30 = sphi %s1119_s30, %s1340_s30   ;;  %s1055_s29 = sphi %s1117_s29, %s1339_s29   ;;  %s1051_s28 = sphi %s1115_s28, %s1338_s28   ;;  %s1047_s27 = sphi %s1113_s27, %s1337_s27  }
   0x4   : > { %s1138_s11 = sadd.s32 1, %s1059_s30   ;;  %s216_s12 = sadd.s32 1, %s1055_s29 }
   0x5   : > { %s213_s13 = ssub.s32 %s1059_s30, %s1138_s11  ;;  %p226_p0 = scmp.ne.s32.totalorder %s1055_s29, %s1051_s28 }
   0x6   : > { %p214_p1 = scmp.eq.s32.totalorder %s213_s13, 0  ;;  %p227_p2 = scmp.eq.s32.totalorder %s1134_s9, 1 }
   0x7   : > { %p232_p3 = scmp.ne.s32.totalorder %s1051_s28, %s1047_s27  ;;  %p233_p4 = scmp.eq.s32.totalorder %s873_s10, 1 }
   0x8   : > { %s1149_s14 = scalar_select %p214_p1, %s1055_s29, %s216_s12  }
   0x9   : > { %p1151_p5 = por %p227_p2, %p226_p0  ;;  %p1155_p6 = por %p233_p4, %p232_p3 }
   0xa   : > { %p876_p7 = scmp.ge.s32.totalorder %s1059_s30, 1  ;;  %p290_p8 = scmp.lt.s32.totalorder %s1059_s30, 3 }
   0xc   : > { %p291_p9 = pnand %p876_p7, %p290_p8 }
   0xd   : > { %v983_v0 = vld [vmem:[%s1327_s1] sm:$0xff] (!%p291_p9)   ;;  %p338_p10 = scmp.lt.s32.totalorder (!%p291_p9), %s1134_s9, 1  ;;  %v984_v1 = vld [vmem:[%s1327_s1 + $0x8] sm:$0xff] (!%p291_p9)   ;;  %s877_s22 = sshll.u32 (!%p291_p9), %s1134_s9, 3  ;;  %vm622_vm0 = vcmask (!%p291_p9), 24576   ;;  %vm392_vm1 = vcmask (!%p291_p9), 261120   ;;  %v649_v56 = vlaneseq (!%p291_p9) }
   0xe   : > { %294 = sbr.rel (%p291_p9) target bundleno = 834 (0x342), region = 52  ;;  %905 = vmatprep.subr.bf16.mxu0 (!%p291_p9), %v983_v0  ;;  %934 = vmatprep.subr.bf16.mxu1 (!%p291_p9), %v983_v0  ;;  %p333_p11 = scmp.lt.s32.totalorder (!%p291_p9), %s877_s22, 15  ;;  %vm478_vm2 = vcmask (!%p291_p9), 1046528   ;;  %vm523_vm3 = vcmask (!%p291_p9), 1045504   ;;  %vm1064_vm4 = vmmov (!%p291_p9), 0   ;;  %vm569_vm5 = vcmask (!%p291_p9), 259072  }
   0xf   : > { %906 = vmatpush3.bf16.msra.mxu0 (!%p291_p9), %v983_v0  ;;  %936 = vmatpush3.bf16.msra.mxu1 (!%p291_p9), %v983_v0  ;;  %s1061_s20 = smov (!%p291_p9), 96   ;;  %v650_v58 = vshrl.u32 (!%p291_p9), %v649_v56, 7  ;;  %vm673_vm6 = vcmask (!%p291_p9), 1041409   ;;  %vm676_vm7 = vcmask (!%p291_p9), 1042434   ;;  %vm679_vm8 = vcmask (!%p291_p9), 1043459   ;;  %s1066_s23 = smov (!%p291_p9), 32  }
  0x10   : > { %907 = vmatprep.subr.bf16.mxu0 (!%p291_p9), %v984_v1  ;;  %935 = vmatprep.subr.bf16.mxu1 (!%p291_p9), %v984_v1  ;;  %vm682_vm9 = vcmask (!%p291_p9), 257024   ;;  %s330_s10 = sand.u32 (!%p291_p9), 1, %s1051_s28   ;;  %vm776_vm10 = vcmask (!%p291_p9), 516096  }
  0x11   : > { %v651_v63 = vsub.s32 (!%p291_p9), 0, %v650_v58 }
  0x13   : > { %908 = vmatpush3.bf16.msra.mxu0 (!%p291_p9), %v984_v1  ;;  %937 = vmatpush3.bf16.msra.mxu1 (!%p291_p9), %v984_v1 }
  0x15   : > { %s1169_s21 = scalar_select %p338_p10, %s1134_s9, 1 }
  0x16   : > { %s1342_s22 = smov (!%p333_p11, %s877_s22), 15 }
  0x17   : > { %s340_s25 = scalar_lea.vmem %s1329_s3, %s1169_s21  ;;  %s343_s12 = scalar_lea.vmem %s1330_s4, %s1169_s21 }
  0x18   : > { %v620_v2 = vld [vmem:[%s340_s25] sm:$0x1]  ;;  %s878_s13 = sshll.u32 %s1342_s22, 2  ;;  %s1062_s22 = smov 64  }
  0x19   : > { %v621_v3 = vmul.f32 0.0001, %v620_v2  ;;  %v634_v4 = vld [vmem:[%s343_s12] sm:$0x1]  ;;  %s336_s19 = scalar_lea.vmem %s1326_s0, %s878_s13  ;;  %s346_s26 = scalar_lea.vmem %s1331_s5, %s1169_s21 }
  0x1a   : > { %v635_v5 = vmul.f32 0.0001, %v634_v4  ;;  %v985_v7 = vld [vmem:[%s336_s19] sm:$0xff]   ;;  %v986_v9 = vld [vmem:[%s336_s19 + $0x8] sm:$0xff]   ;;  %v987_v10 = vld [vmem:[%s336_s19 + $0x10] sm:$0xff]   ;;  %s891_s12 = sshll.u32 %s1134_s9, 4 }
  0x1b   : > { %v623_v6 = vsel %vm622_vm0, %v621_v3, -inf  ;;  %909 = vmatprep.mubr.msk.bf16.mxu0 %vm392_vm1, %v985_v7  ;;  %v988_v11 = vld [vmem:[%s336_s19 + $0x18] sm:$0xff]   ;;  %913 = vmatprep.mubr.msk.bf16.mxu1 %vm392_vm1, %v987_v10  ;;  %v690_v2 = vld [vmem:[%s1332_s6] sm:$0xff]  ;;  %v692_v4 = vld [vmem:[%s1332_s6 + $0x10] sm:$0xff]  ;;  %s331_s13 = scalar_lea.vmem [#allocation2], %s330_s10  ;;  %s779_s21 = scalar_lea.sflag [#allocation3], %s330_s10 }
  0x1c   : > { %624 = vmax.xlane.f32.xlu0 %v623_v6  ;;  %v636_v8 = vsel %vm622_vm0, %v635_v5, -inf  ;;  %910 = vmatmul.mubr.msk.bf16.vlgmr.msra.gmra.mrb[0].mxu0 %vm392_vm1, %v986_v9  ;;  %v693_v7 = vld [vmem:[%s1332_s6 + $0x18] sm:$0xff]  ;;  %s791_s17 = sshll.u32 %s331_s13, 4  ;;  %s1067_s9 = smov [#allocation2]   ;;  %s1285_s17 = int_to_ptr.vmem [resolvable:$true] %s791_s17 }
  0x1d   : > { %914 = vmatmul.mubr.msk.bf16.vlgmr.msra.gmra.mrb[0].mxu1 %vm392_vm1, %v988_v11  ;;  %v932_v9 = vpack.c.bf16 %v693_v7, %v692_v4 }
  0x20   : > { %637 = vmax.xlane.f32.xlu0 %v636_v8  ;;  %v1065_v8 = vmov 0.0  }
  0x21   : > { %925 = vmatprep.mubr.msk.f32.mxu1 %vm1064_vm4, %v1065_v8 }
  0xa9   : > { %v625_v12 = vpop.xlane.xlu0 %624 }
  0xaa   : > { %v626_v13 = vsub.f32 %v621_v3, %v625_v12  ;;  %v691_v3 = vld [vmem:[%s1332_s6 + $0x8] sm:$0xff] }
  0xab   : > { %v929_v6 = vpack.c.bf16 %v691_v3, %v690_v2 }
  0xac   : > { %v627_v14 = vmul.f32 1.442695, %v626_v13 }
  0xad   : > { %v638_v15 = vpop.xlane.xlu0 %637 }
  0xae   : > { %989 = vpow2.f32 %v627_v14  ;;  %v639_v16 = vsub.f32 %v635_v5, %v638_v15  ;;  %v1063_v5 = vmov 0.0|0.0  }
  0xaf   : > { %928 = vmatprep.subr.bf16.mxu1 %v1063_v5 }
  0xb0   : > { %v640_v17 = vmul.f32 1.442695, %v639_v16  ;;  %930 = vmatpush3.bf16.msra.mxu1 %v929_v6 }
  0xb1   : > { %931 = vmatprep.subr.bf16.mxu1 %v1063_v5 }
  0xb2   : > { %991 = vpow2.f32 %v640_v17 }
  0xb4   : > { %933 = vmatpush3.bf16.msra.mxu1 %v932_v9 }
  0xb8   : > { %v1189_v18 = vpop.eup %989 }
  0xb9   : > { %v629_v19 = vsel %vm622_vm0, %v1189_v18, 0.0 }
  0xba   : > { %630 = vadd.xlane.f32.xlu1 %v629_v19 }
  0xbc   : > { %v1193_v20 = vpop.eup %991 }
  0xbd   : > { %v642_v21 = vsel %vm622_vm0, %v1193_v20, 0.0 }
  0xbe   : > { %643 = vadd.xlane.f32.xlu1 %v642_v21 }
  0xef   : > { %v1197_v22 = vpop.f32.mrb[0].mxu0 }
  0xf0   : > { %v482_v23 = vrot.slane %v1197_v22, 1  ;;  %v527_v24 = vrot.slane %v1197_v22, 2  ;;  %v1201_v25 = vpop.f32.mrb[1].mxu0  ;;  %v1207_v29 = vpop.f32.mrb[0].mxu1 }
  0xf1   : > { %v479_v26 = vrot.slane %v1201_v25, 1  ;;  %v524_v27 = vrot.slane %v1201_v25, 2  ;;  %v1205_v28 = vpop.f32.mrb[2].mxu0  ;;  %v488_v32 = vrot.slane %v1207_v29, 1  ;;  %v533_v33 = vrot.slane %v1207_v29, 2  ;;  %v1213_v34 = vpop.f32.mrb[1].mxu1 }
  0xf2   : > { %v483_v30 = vrot.slane %v1205_v28, 1  ;;  %v528_v31 = vrot.slane %v1205_v28, 2  ;;  %v1215_v35 = vpop.f32.mrb[3].mxu0  ;;  %v485_v36 = vrot.slane %v1213_v34, 1  ;;  %v530_v37 = vrot.slane %v1213_v34, 2  ;;  %v1219_v38 = vpop.f32.mrb[2].mxu1 }
  0xf3   : > { %v480_v39 = vrot.slane %v1215_v35, 1  ;;  %v525_v40 = vrot.slane %v1215_v35, 2  ;;  %v489_v41 = vrot.slane %v1219_v38, 1  ;;  %v534_v42 = vrot.slane %v1219_v38, 2  ;;  %v1226_v44 = vpop.f32.mrb[3].mxu1 }
  0xf4   : > { %497 = vrot.lane.b32.xlu1 %v483_v30, %s1061_s20  ;;  %v484_v43 = vsel %vm478_vm2, %v482_v23, %v483_v30  ;;  %v529_v45 = vsel %vm523_vm3, %v527_v24, %v528_v31  ;;  %v486_v46 = vrot.slane %v1226_v44, 1  ;;  %v531_v47 = vrot.slane %v1226_v44, 2 }
  0xf5   : > { %495 = vrot.lane.b32.xlu0 %v484_v43, %s1061_s20  ;;  %v481_v48 = vsel %vm478_vm2, %v479_v26, %v480_v39  ;;  %v526_v49 = vsel %vm523_vm3, %v524_v27, %v525_v40  ;;  %v490_v50 = vsel %vm478_vm2, %v488_v32, %v489_v41  ;;  %v535_v51 = vsel %vm523_vm3, %v533_v33, %v534_v42 }
  0xf6   : > { %v532_v52 = vsel %vm523_vm3, %v530_v37, %v531_v47  ;;  %v487_v53 = vsel %vm478_vm2, %v485_v36, %v486_v46 }
  0xf8   : > { %505 = vrot.lane.b32.xlu1 %v489_v41, %s1061_s20 }
  0xf9   : > { %503 = vrot.lane.b32.xlu0 %v490_v50, %s1061_s20 }
  0xfc   : > { %542 = vrot.lane.b32.xlu1 %v528_v31, %s1062_s22 }
  0xfd   : > { %540 = vrot.lane.b32.xlu0 %v529_v45, %s1062_s22 }
 0x100   : > { %501 = vrot.lane.b32.xlu1 %v486_v46, %s1061_s20 }
 0x101   : > { %491 = vrot.lane.b32.xlu0 %v481_v48, %s1061_s20 }
 0x104   : > { %493 = vrot.lane.b32.xlu1 %v480_v39, %s1061_s20 }
 0x105   : > { %544 = vrot.lane.b32.xlu0 %v532_v52, %s1062_s22 }
 0x108   : > { %546 = vrot.lane.b32.xlu1 %v531_v47, %s1062_s22 }
 0x109   : > { %536 = vrot.lane.b32.xlu0 %v526_v49, %s1062_s22 }
 0x10c   : > { %538 = vrot.lane.b32.xlu1 %v525_v40, %s1062_s22 }
 0x10d   : > { %548 = vrot.lane.b32.xlu0 %v535_v51, %s1062_s22 }
 0x110   : > { %499 = vrot.lane.b32.xlu1 %v487_v53, %s1061_s20  ;;  %s1283_s20 = scalar_lea.hbm %s1334_s8, %s891_s12 }
 0x114   : > { %550 = vrot.lane.b32.xlu1 %v534_v42, %s1062_s22  ;;  %s997_s22 = scalar_lea.vmem %s1285_s17, 16 }
 0x115   : > { %p998_p12 = scmp.ne.s32.totalorder %s1285_s17, %s997_s22 }
 0x117   : > { %p999_p13 = pnand %p998_p12, %p1151_p5 }
 0x119   : > { %p1000_p0 = pneg %p999_p13 }
 0x147   : > { %v631_v54 = vpop.xlane.xlu1 %630 }
 0x148   : > { %993 = vrcp.f32 %v631_v54 }
 0x14b   : > { %v644_v55 = vpop.xlane.xlu1 %643 }
 0x14c   : > { %995 = vrcp.f32 %v644_v55 }
 0x152   : > { %v994_v57 = vpop.eup %993 }
 0x153   : > { %v633_v60 = vmul.f32 %v994_v57, %v1189_v18 }
 0x156   : > { %v996_v59 = vpop.eup %995 }
 0x157   : > { %v646_v61 = vmul.f32 %v996_v59, %v1193_v20 }
 0x159   : > { %v647_v62 = vmul.f32 %v646_v61, %v633_v60 }
 0x15b   : > { %v648_v0 = vmul.f32 4.0, %v647_v62 }
 0x15d   : > { %v652_v1 = vrot.slane %v648_v0, %v651_v63 }
 0x15f   : > { %654 = vbcast.lane.b32.xlu0 %v652_v1, 256 }
 0x166   : > { %v498_v10 = vpop.permute.xlu1 %497 }
 0x167   : > { %v496_v11 = vpop.permute.xlu0 %495  ;;  %v518_v14 = vadd.f32 %v1205_v28, %v498_v10 }
 0x168   : > { %v517_v15 = vadd.f32 %v1197_v22, %v496_v11 }
 0x16a   : > { %v506_v12 = vpop.permute.xlu1 %505 }
 0x16b   : > { %v504_v13 = vpop.permute.xlu0 %503  ;;  %v522_v48 = vadd.f32 %v1219_v38, %v506_v12 }
 0x16c   : > { %v521_v46 = vadd.f32 %v1207_v29, %v504_v13  ;;  %v889_v13 = vld [vmem:[%s1328_s2] ss:$0 sm:$0xff] }
 0x16e   : > { %v543_v16 = vpop.permute.xlu1 %542 }
 0x16f   : > { %v563_v17 = vadd.f32 %v543_v16, %v518_v14  ;;  %v541_v18 = vpop.permute.xlu0 %540 }
 0x170   : > { %v562_v19 = vadd.f32 %v541_v18, %v517_v15 }
 0x171   : > { %v579_v20 = vsel %vm569_vm5, %v563_v17, -inf }
 0x172   : > { %v578_v21 = vsel %vm392_vm1, %v562_v19, -inf  ;;  %v502_v23 = vpop.permute.xlu1 %501 }
 0x173   : > { %v580_v24 = vmax.f32 %v578_v21, %v579_v20  ;;  %v492_v26 = vpop.permute.xlu0 %491  ;;  %v520_v39 = vadd.f32 %v502_v23, %v1226_v44 }
 0x174   : > { %v515_v32 = vadd.f32 %v492_v26, %v1201_v25 }
 0x175   : > { %v581_v29 = vrot.slane %v580_v24, 4 }
 0x176   : > { %v494_v27 = vpop.permute.xlu1 %493 }
 0x177   : > { %v545_v30 = vpop.permute.xlu0 %544  ;;  %v516_v22 = vadd.f32 %v494_v27, %v1215_v35  ;;  %v582_v59 = vmax.f32 %v580_v24, %v581_v29 }
 0x179   : > { %v583_v62 = vrot.slane %v582_v59, 2 }
 0x17a   : > { %v547_v31 = vpop.permute.xlu1 %546 }
 0x17b   : > { %v537_v28 = vpop.permute.xlu0 %536  ;;  %v565_v47 = vadd.f32 %v547_v31, %v520_v39  ;;  %v584_v2 = vmax.f32 %v582_v59, %v583_v62 }
 0x17c   : > { %v560_v33 = vadd.f32 %v537_v28, %v515_v32 }
 0x17d   : > { %v588_v51 = vsel %vm569_vm5, %v565_v47, -inf  ;;  %v585_v6 = vrot.slane %v584_v2, 1 }
 0x17e   : > { %v539_v36 = vpop.permute.xlu1 %538  ;;  %v568_v40 = vsel %vm392_vm1, %v560_v33, -inf }
 0x17f   : > { %v561_v37 = vadd.f32 %v539_v36, %v516_v22  ;;  %v549_v43 = vpop.permute.xlu0 %548  ;;  %v586_v10 = vmax.f32 %v584_v2, %v585_v6 }
 0x180   : > { %v566_v35 = vadd.f32 %v549_v43, %v521_v46 }
 0x181   : > { %v570_v41 = vsel %vm569_vm5, %v561_v37, -inf  ;;  %v613_v15 = vadd.f32 %v889_v13, %v586_v10 }
 0x182   : > { %v571_v42 = vmax.f32 %v568_v40, %v570_v41  ;;  %v500_v45 = vpop.permute.xlu1 %499  ;;  %v596_v54 = vsel %vm392_vm1, %v566_v35, -inf  ;;  %v694_v35 = vld [vmem:[%s1333_s7] sm:$0x1] }
 0x183   : > { %v519_v25 = vadd.f32 %v500_v45, %v1213_v34  ;;  %v617_v19 = vmax.f32 %v613_v15, 0.0 }
 0x184   : > { %v572_v34 = vrot.slane %v571_v42, 4 }
 0x185   : > { %v564_v49 = vadd.f32 %v545_v30, %v519_v25 }
 0x186   : > { %v551_v50 = vpop.permute.xlu1 %550  ;;  %v573_v61 = vmax.f32 %v571_v42, %v572_v34 }
 0x187   : > { %v587_v44 = vsel %vm392_vm1, %v564_v49, -inf  ;;  %v567_v52 = vadd.f32 %v551_v50, %v522_v48 }
 0x188   : > { %v589_v53 = vmax.f32 %v587_v44, %v588_v51  ;;  %v574_v1 = vrot.slane %v573_v61, 2 }
 0x189   : > { %v597_v55 = vsel %vm569_vm5, %v567_v52, -inf  ;;  %v768_v52 = vld [vmem:[%s346_s26] sm:$0x1] }
 0x18a   : > { %v598_v56 = vmax.f32 %v596_v54, %v597_v55  ;;  %v590_v57 = vrot.slane %v589_v53, 4  ;;  %v575_v5 = vmax.f32 %v573_v61, %v574_v1 }
 0x18c   : > { %v599_v58 = vrot.slane %v598_v56, 4  ;;  %v591_v38 = vmax.f32 %v589_v53, %v590_v57  ;;  %v576_v9 = vrot.slane %v575_v5, 1  ;;  %v769_v53 = vmax.f32 %v768_v52, 0.0 }
 0x18e   : > { %v600_v60 = vmax.f32 %v598_v56, %v599_v58  ;;  %v592_v63 = vrot.slane %v591_v38, 2  ;;  %v577_v14 = vmax.f32 %v575_v5, %v576_v9 }
 0x190   : > { %v601_v0 = vrot.slane %v600_v60, 2  ;;  %v593_v3 = vmax.f32 %v591_v38, %v592_v63  ;;  %v612_v18 = vadd.f32 %v889_v13, %v577_v14 }
 0x192   : > { %v602_v4 = vmax.f32 %v600_v60, %v601_v0  ;;  %v594_v7 = vrot.slane %v593_v3, 1  ;;  %v616_v30 = vmax.f32 %v612_v18, 0.0 }
 0x194   : > { %v603_v8 = vrot.slane %v602_v4, 1  ;;  %v595_v11 = vmax.f32 %v593_v3, %v594_v7 }
 0x196   : > { %v604_v12 = vmax.f32 %v602_v4, %v603_v8  ;;  %v614_v16 = vadd.f32 %v889_v13, %v595_v11 }
 0x198   : > { %v615_v17 = vadd.f32 %v889_v13, %v604_v12  ;;  %v618_v20 = vmax.f32 %v614_v16, 0.0 }
 0x19a   : > { %v619_v23 = vmax.f32 %v615_v17, 0.0 }
 0x1d1   : > { %v655_v21 = vpop.permute.xlu0 %654 }
 0x1d2   : > { %v657_v24 = vrot.slane %v655_v21, 1  ;;  %v658_v26 = vrot.slane %v655_v21, 2  ;;  %v659_v27 = vrot.slane %v655_v21, 3  ;;  %v664_v22 = vmul.f32 %v655_v21, %v616_v30 }
 0x1d4   : > { %v665_v31 = vmul.f32 %v657_v24, %v617_v19  ;;  %v666_v32 = vmul.f32 %v658_v26, %v618_v20  ;;  %v667_v28 = vmul.f32 %v659_v27, %v619_v23 }
 0x1d6   : > { %v672_v33 = vrot.slane %v665_v31, 7  ;;  %v675_v36 = vrot.slane %v666_v32, 6  ;;  %v678_v39 = vrot.slane %v667_v28, 5 }
 0x1d8   : > { %v674_v37 = vsel %vm673_vm6, %v672_v33, %v664_v22 }
 0x1d9   : > { %v677_v40 = vsel %vm676_vm7, %v675_v36, %v674_v37 }
 0x1da   : > { %v680_v41 = vsel %vm679_vm8, %v678_v39, %v677_v40 }
 0x1db   : > { %v683_v42 = vsel %vm682_vm9, %v680_v41, 0.0 }
 0x1dc   : > { %v684_v43 = vrot.slane %v683_v42, 4 }
 0x1de   : > { %v685_v45 = vadd.f32 %v684_v43, %v683_v42 }
 0x1e0   : > { %v686_v46 = vrot.slane %v685_v45, 2 }
 0x1e2   : > { %v687_v47 = vadd.f32 %v686_v46, %v685_v45 }
 0x1e4   : > { %v688_v25 = vrot.slane %v687_v47, 1 }
 0x1e6   : > { %v689_v48 = vadd.f32 %v688_v25, %v687_v47 }
 0x1e8   : > { %926 = vmatmul.mubr.msk.f32.vlgmr.msra.gmra.mrb[4].mxu1 %vm392_vm1, %v689_v48 }
 0x2bb   : > { %v764_v49 = vpop.f32.mrb[4].mxu1 }
 0x2bc   : > { %v765_v50 = vadd.f32 %v764_v49, %v694_v35  ;;  %v927_v51 = vpop.f32.mrb[5].mxu1 }
 0x2be   : > { %v770_v44 = vmax.f32 %v765_v50, 0.0 }
 0x2c0   : > { %772 = vrot.lane.b32.xlu1 %v770_v44, %s1066_s23  ;;  %s1001_s23 = sshll.u32 %s1067_s9, 4  ;;  %s1002_s23 = int_to_ptr.vmem [resolvable:$false] %s1001_s23 }
 0x2c1   : > { %s1003_s24 = scalar_lea.vmem %s1002_s23, 32  ;;  %p1004_p1 = scmp.lt.s32.totalorder %s1285_s17, %s1002_s23 }
 0x2c2   : > { %p1005_p2 = scmp.lt.s32.totalorder %s1003_s24, %s997_s22 }
 0x2c4   : > { %p1006_p3 = por %p1005_p2, %p1004_p1 }
 0x2c6   : > { %p1007_p4 = pnand %p1006_p3, %p1000_p0 }
 0x332   : > { %v773_v54 = vpop.permute.xlu1 %772 }
 0x333   : > { %v775_v55 = vsel %vm392_vm1, %v769_v53, %v773_v54 }
 0x334   : > { %777 = vst.msk [vmem:[%s331_s13] sm:$0x1] %vm776_vm10, %v775_v55 }
 0x335   : > { %1010 = shalt.err (!%p1007_p4)
}
 0x336   : > { %s1011_s25 = scalar_lea.hbm %s1283_s20, 16  ;;  %s1015_s12 = scalar_lea.hbm %s1334_s8, 32 }
 0x337   : > { %p1012_p7 = scmp.ne.s32.totalorder %s1283_s20, %s1011_s25  ;;  %p1016_p10 = scmp.lt.u32.totalorder %s1283_s20, %s1334_s8 }
 0x338   : > { %p1017_p11 = scmp.lt.u32.totalorder %s1015_s12, %s1011_s25  ;;  %p1019_p13 = scmp.lt.u32.totalorder %s1011_s25, %s1283_s20 }
 0x339   : > { %p1013_p8 = pnand %p1012_p7, %p1151_p5 }
 0x33a   : > { %p1018_p12 = por %p1017_p11, %p1016_p10 }
 0x33b   : > { %p1014_p9 = pneg %p1013_p8 }
 0x33c   : > { %p1020_p0 = por %p1019_p13, %p1018_p12 }
 0x33e   : > { %p1021_p1 = pnand %p1020_p0, %p1014_p9 }
 0x340   : > { %1024 = shalt.err (!%p1021_p1)
}
 0x341   : > { %938 = dma.vmem_to_hbm [thread:$0]  (%p1151_p5), %s1285_s17, 16, %s1283_s20, %s779_s21  }
 0x342 PF: > { %p944_p2 = scmp.ge.s32.totalorder %s1059_s30, 2  ;;  %s803_s19 = sand.u32 1, %s1047_s27  }
 0x343   : > { %s804_s22 = scalar_lea.sflag [#allocation3], %s803_s19 }
 0x344   : > { %p941_p3 = pnand %p944_p2, %p1155_p6 }
 0x346   : > { %1042 = dma.done.wait (!%p941_p3), %s804_s22, 16  }
 0x347   : > { %1044 = vsyncadd (!%p941_p3), %s804_s22, 4294967280  ;;  %p18_p4 = scmp.ge.s32.totalorder %s1138_s11, 4   ;;  %s1337_s27 = smov %s1051_s28 }
 0x348   : > { %s1338_s28 = smov %s1055_s29  ;;  %s1339_s29 = smov %s1149_s14 }
 0x349   : > { %s1340_s30 = smov %s1138_s11  ;;  %20 = sbr.rel (!%p18_p4) target bundleno = 3 (0x3), region = 96 }
 0x350   :  { %808 = vsyncpa [#allocation3], 1 }
 0x351   :  { %810 = vsyncpa [#allocation3 + $0x1], 1 }

</bundles_post_ra>
